<compile_context>
chip_gen: v6e
topology: v6e:2x2x1
jax: 0.10.0
libtpu: 0.0.40
codegen_flags: <defaults>
</compile_context>

<pallas_src>
import jax
import jax.numpy as jnp
from jax.experimental import pallas as pl
from jax.experimental.pallas import tpu as pltpu

LN_EPS = 1e-5
_ROW_ALIGN = 16  # covers f32 sublane (8) and bf16 sublane packing (16)


def _round_up(n, m):
    return ((n + m - 1) // m) * m


# ----------------------------------------------------------------------------
# Kernel: one (token-tile, H-chunk) grid step of the fused adapter.
# ----------------------------------------------------------------------------
def _adapter_kernel(x_ref, dw_ref, db_ref, uw_ref, ub_ref, g_ref, b_ref,
                    o_ref, acc_ref):
    k = pl.program_id(1)
    nk = pl.num_programs(1)

    @pl.when(k == 0)
    def _init():
        acc_ref[...] = jnp.zeros_like(acc_ref)

    # down_proj chunk (D -> tk) + bias + ReLU; MXU in native dtype, f32 acc.
    x_nat = x_ref[...]
    h = jnp.dot(x_nat, dw_ref[...], preferred_element_type=jnp.float32)
    h = jnp.maximum(h + db_ref[...].astype(jnp.float32), 0.0)

    # up_proj chunk (tk -> D), accumulated into the resident f32 scratch.
    acc_ref[...] += jnp.dot(h.astype(uw_ref.dtype), uw_ref[...],
                            preferred_element_type=jnp.float32)

    @pl.when(k == nk - 1)
    def _epilogue():
        y = acc_ref[...] + ub_ref[...].astype(jnp.float32)
        # dropout: FairseqDropout is identity at inference time.
        # TODO(synk): training-mode dropout (prng + mask) not implemented.
        y = y + x_ref[...].astype(jnp.float32)          # residual, deferred f32 cast

        # LayerNorm over the feature (lane) axis, fused E[y] / E[y^2] stats.
        inv_d = 1.0 / y.shape[-1]
        s1 = jnp.sum(y, axis=-1, keepdims=True)
        s2 = jnp.sum(y * y, axis=-1, keepdims=True)
        mean = s1 * inv_d
        var = jnp.maximum(s2 * inv_d - mean * mean, 0.0)
        y = (y - mean) * jax.lax.rsqrt(var + LN_EPS)
        y = y * g_ref[...].astype(jnp.float32) + b_ref[...].astype(jnp.float32)
        o_ref[...] = y.astype(o_ref.dtype)


# ----------------------------------------------------------------------------
# Wrapper helpers.
# ----------------------------------------------------------------------------
def _spec(shape, index_map, *, single_buffer=False):
    """BlockSpec, optionally single-buffered for grid-constant blocks."""
    if single_buffer and hasattr(pl, "Buffered"):
        try:
            return pl.BlockSpec(shape, index_map, pipeline_mode=pl.Buffered(1))
        except TypeError:  # older jax without pipeline_mode: fall back cleanly
            pass
    return pl.BlockSpec(shape, index_map)


def _tpu_vmem_capacity(default=64 << 20):
    try:
        return int(pltpu.get_tpu_info().vmem_capacity_bytes)
    except Exception:
        return default  # conservative (v7x-sized) fallback


def _pick_tk(D, H, w_bytes, budget_bytes):
    """H-chunk size so resident weight blocks stay within the VMEM budget."""
    if 2 * D * H * w_bytes <= budget_bytes or H % 128 != 0:
        return H  # full weights, single-buffered constant blocks
    # Chunked weights stream over the k axis and are double-buffered (factor 4).
    for cand in range((H // 128) * 128, 127, -128):
        if H % cand == 0 and 4 * D * cand * w_bytes <= budget_bytes:
            return cand
    return 128


def _pick_tm(N, tm_cap, align=_ROW_ALIGN):
    """Largest tile <= cap that divides the aligned token count and keeps
    >= 2 grid steps (megacore sharding / pipeline overlap) when possible."""
    n_align = _round_up(max(N, 1), align)
    tm_cap = max(align, (min(tm_cap, n_align) // align) * align)
    for cand in range(tm_cap, align - 1, -align):
        if n_align % cand == 0 and (n_align // cand >= 2 or n_align <= align):
            return cand
    return tm_cap


# ----------------------------------------------------------------------------
# Public entry point.
# ----------------------------------------------------------------------------
def stable_adapter(x, params, *, tm=512, vmem_limit_bytes=None):
    """x: (..., D) array; params: dict of weights. Returns same shape/dtype."""
    D = x.shape[-1]
    H = params["down_w"].shape[-1]
    orig_shape = x.shape
    x2 = x.reshape(-1, D)
    N = x2.shape[0]

    x_bytes = jnp.dtype(x.dtype).itemsize
    w_bytes = jnp.dtype(params["down_w"].dtype).itemsize
    vmem_cap = _tpu_vmem_capacity()

    # Hidden-dim chunking: cap resident weight VMEM (critical on v7x 64 MiB).
    tk = _pick_tk(D, H, w_bytes, budget_bytes=vmem_cap // 4)
    num_k = H // tk
    w_const = num_k == 1  # weight blocks constant across the grid?

    # Token tile from the activation VMEM budget:
    #   2x in + 2x out tiles, f32 accumulator, ~3 f32 temporaries, h chunk.
    row_bytes = 4 * D * x_bytes + 4 * D * 4 + tk * 4
    tm_cap = min(tm, max(_ROW_ALIGN, (vmem_cap // 3) // row_bytes))
    tm_eff = _pick_tm(N, tm_cap)
    n_pad = _round_up(N, tm_eff)
    if n_pad != N:
        x2 = jnp.pad(x2, ((0, n_pad - N), (0, 0)))

    dw, db = params["down_w"], params["down_b"].reshape(1, H)
    uw, ub = params["up_w"], params["up_b"].reshape(1, D)
    g, b = params["ln_g"].reshape(1, D), params["ln_b"].reshape(1, D)

    in_specs = [
        pl.BlockSpec((tm_eff, D), lambda i, k: (i, 0)),               # x tile
        _spec((D, tk), lambda i, k: (0, k), single_buffer=w_const),   # down_w
        _spec((1, tk), lambda i, k: (0, k), single_buffer=w_const),   # down_b
        _spec((tk, D), lambda i, k: (k, 0), single_buffer=w_const),   # up_w
        _spec((1, D), lambda i, k: (0, 0), single_buffer=True),       # up_b
        _spec((1, D), lambda i, k: (0, 0), single_buffer=True),       # ln gamma
        _spec((1, D), lambda i, k: (0, 0), single_buffer=True),       # ln beta
    ]

    if vmem_limit_bytes is None:
        w_bufs = 1 if w_const else 2
        est = (w_bufs * 2 * D * tk * w_bytes           # down_w + up_w chunks
               + 4 * tm_eff * D * x_bytes              # 2x in + 2x out tiles
               + tm_eff * D * 4                        # f32 accumulator scratch
               + 3 * tm_eff * D * 4 + tm_eff * tk * 4  # f32 temporaries
               + 8 * D * 4)                            # bias / gamma / beta rows
        vmem_limit_bytes = min(max(int(est * 1.5) + (4 << 20), 16 << 20),
                               max(vmem_cap - (4 << 20), 16 << 20))

    cost = pl.CostEstimate(
        flops=4 * n_pad * D * H,            # down + up matmuls
        transcendentals=n_pad,              # rsqrt per token row
        bytes_accessed=2 * D * H * w_bytes + 2 * n_pad * D * x_bytes + 6 * D * 4,
    )

    out = pl.pallas_call(
        _adapter_kernel,
        out_shape=jax.ShapeDtypeStruct((n_pad, D), x.dtype),
        grid_spec=pltpu.PrefetchScalarGridSpec(
            num_scalar_prefetch=0,
            grid=(n_pad // tm_eff, num_k),
            in_specs=in_specs,
            out_specs=pl.BlockSpec((tm_eff, D), lambda i, k: (i, 0)),
            scratch_shapes=[pltpu.VMEM((tm_eff, D), jnp.float32)],
        ),
        compiler_params=pltpu.CompilerParams(
            dimension_semantics=("parallel", "arbitrary"),
            vmem_limit_bytes=int(vmem_limit_bytes)),
        cost_estimate=cost,
    )(x2, dw, db, uw, ub, g, b)

    if n_pad != N:
        out = out[:N]
    return out.reshape(orig_shape)


# ----------------------------------------------------------------------------
# Parameter init + pure-JAX reference (for the correctness check below).
# ----------------------------------------------------------------------------
def init_params(key, feature_dim, dtype=jnp.float32):
    # For production, pass dtype=jnp.bfloat16 for the projection weights:
    # halves weight DMA / VMEM and uses the native bf16 MXU path.
    H = feature_dim // 2
    k = jax.random.split(key, 4)
    lim_d = 1.0 / (feature_dim ** 0.5)
    lim_u = 1.0 / (H ** 0.5)
    return {
        "down_w": jax.random.uniform(k[0], (feature_dim, H), jnp.float32, -lim_d, lim_d).astype(dtype),
        "down_b": jax.random.uniform(k[1], (H,), jnp.float32, -lim_d, lim_d),
        "up_w": jax.random.uniform(k[2], (H, feature_dim), jnp.float32, -lim_u, lim_u).astype(dtype),
        "up_b": jax.random.uniform(k[3], (feature_dim,), jnp.float32, -lim_u, lim_u),
        "ln_g": jnp.ones((feature_dim,), jnp.float32),
        "ln_b": jnp.zeros((feature_dim,), jnp.float32),
    }


def reference(x, p):
    xf = x.astype(jnp.float32)
    h = jnp.maximum(xf @ p["down_w"].astype(jnp.float32) + p["down_b"], 0.0)
    y = h @ p["up_w"].astype(jnp.float32) + p["up_b"]
    y = y + xf
    mean = jnp.mean(y, axis=-1, keepdims=True)
    var = jnp.mean((y - mean) ** 2, axis=-1, keepdims=True)
    y = (y - mean) * jax.lax.rsqrt(var + LN_EPS)
    return y * p["ln_g"] + p["ln_b"]


if __name__ == "__main__":
    key = jax.random.PRNGKey(0)
    k_x, k_p = jax.random.split(key)

    seq, batch, feature_dim = 8, 2, 32  # fairseq convention: (T, B, C)
    x = jax.random.normal(k_x, (seq, batch, feature_dim), jnp.float32)
    params = init_params(k_p, feature_dim)

    # f32 correctness check against the pure-JAX reference.
    out = jax.block_until_ready(stable_adapter(x, params))
    ref = reference(x, params)
    assert out.shape == x.shape and out.dtype == x.dtype
    assert jnp.allclose(out, ref, atol=1e-4, rtol=1e-4), "mismatch vs reference"

    # Mixed-precision smoke test: bf16 activations + bf16 projection weights
    # (native bf16 MXU path, f32 accumulation / epilogue inside the kernel).
    x_bf16 = x.astype(jnp.bfloat16)
    p_bf16 = {name: (v.astype(jnp.bfloat16) if name in ("down_w", "up_w") else v)
              for name, v in params.items()}
    out_bf16 = jax.block_until_ready(stable_adapter(x_bf16, p_bf16))
    assert out_bf16.shape == x.shape and out_bf16.dtype == jnp.bfloat16
    assert bool(jnp.all(jnp.isfinite(out_bf16.astype(jnp.float32))))

    print("KERNEL_OK")
</pallas_src>

<mosaic_0001>
module attributes {stable_mosaic.version = 11 : i64} {
  func.func @_adapter_kernel(%arg0: i32, %arg1: i32, %arg2: memref<16x32xf32, #tpu.memory_space<vmem>>, %arg3: memref<32x16xf32, #tpu.memory_space<vmem>>, %arg4: memref<1x16xf32, #tpu.memory_space<vmem>>, %arg5: memref<16x32xf32, #tpu.memory_space<vmem>>, %arg6: memref<1x32xf32, #tpu.memory_space<vmem>>, %arg7: memref<1x32xf32, #tpu.memory_space<vmem>>, %arg8: memref<1x32xf32, #tpu.memory_space<vmem>>, %arg9: memref<16x32xf32, #tpu.memory_space<vmem>>, %arg10: memref<16x32xf32, #tpu.memory_space<vmem>>) attributes {dimension_semantics = [#tpu.dimension_semantics<parallel>, #tpu.dimension_semantics<arbitrary>], iteration_bounds = array<i64: 1, 1>, scalar_prefetch = 0 : i64, scratch_operands = 1 : i64, tpu.core_type = #tpu.core_type<tc>, window_params = [{transform_indices = @transform_0, window_bounds = array<i64: 16, 32>}, {pipeline_mode = #tpu.pipeline_mode<synchronous>, transform_indices = @transform_1, window_bounds = array<i64: 32, 16>}, {pipeline_mode = #tpu.pipeline_mode<synchronous>, transform_indices = @transform_2, window_bounds = array<i64: 1, 16>}, {pipeline_mode = #tpu.pipeline_mode<synchronous>, transform_indices = @transform_3, window_bounds = array<i64: 16, 32>}, {pipeline_mode = #tpu.pipeline_mode<synchronous>, transform_indices = @transform_4, window_bounds = array<i64: 1, 32>}, {pipeline_mode = #tpu.pipeline_mode<synchronous>, transform_indices = @transform_5, window_bounds = array<i64: 1, 32>}, {pipeline_mode = #tpu.pipeline_mode<synchronous>, transform_indices = @transform_6, window_bounds = array<i64: 1, 32>}, {transform_indices = @transform_7, window_bounds = array<i64: 16, 32>}]} {
    %c0_i32 = arith.constant 0 : i32
    %0 = arith.cmpi eq, %arg1, %c0_i32 : i32
    %1 = arith.extui %0 : i1 to i32
    %c0_i32_0 = arith.constant 0 : i32
    %2 = arith.cmpi ne, %1, %c0_i32_0 : i32
    scf.if %2 {
      %cst_16 = arith.constant 0.000000e+00 : f32
      %19 = vector.broadcast %cst_16 : f32 to vector<16x32xf32>
      %c0_17 = arith.constant 0 : index
      %c0_18 = arith.constant 0 : index
      %20 = vector.load %arg10[%c0_17, %c0_18] : memref<16x32xf32, #tpu.memory_space<vmem>>, vector<16x32xf32>
      tpu.vector_store %arg10[%c0_17, %c0_18], %19 {strides = array<i32>} : memref<16x32xf32, #tpu.memory_space<vmem>>, vector<16x32xf32>,
    } else {
    }
    %c0 = arith.constant 0 : index
    %c0_1 = arith.constant 0 : index
    %3 = vector.load %arg2[%c0, %c0_1] : memref<16x32xf32, #tpu.memory_space<vmem>>, vector<16x32xf32>
    %c0_2 = arith.constant 0 : index
    %c0_3 = arith.constant 0 : index
    %4 = vector.load %arg3[%c0_2, %c0_3] : memref<32x16xf32, #tpu.memory_space<vmem>>, vector<32x16xf32>
    %cst = arith.constant dense<0.000000e+00> : vector<16x16xf32>
    %5 = tpu.matmul %3, %4, %cst {dimension_numbers = #tpu.dot_dimension_numbers<[1], [0], [0], [1], [0, 0, 1, 1], [], []>} : vector<16x32xf32>, vector<32x16xf32>, vector<16x16xf32> -> vector<16x16xf32>
    %c0_4 = arith.constant 0 : index
    %c0_5 = arith.constant 0 : index
    %6 = vector.load %arg4[%c0_4, %c0_5] : memref<1x16xf32, #tpu.memory_space<vmem>>, vector<1x16xf32>
    %7 = vector.broadcast %6 : vector<1x16xf32> to vector<16x16xf32>
    %8 = arith.addf %5, %7 : vector<16x16xf32>
    %cst_6 = arith.constant 0.000000e+00 : f32
    %9 = vector.broadcast %cst_6 : f32 to vector<16x16xf32>
    %10 = arith.maximumf %8, %9 : vector<16x16xf32>
    %c0_7 = arith.constant 0 : index
    %c0_8 = arith.constant 0 : index
    %11 = vector.load %arg10[%c0_7, %c0_8] : memref<16x32xf32, #tpu.memory_space<vmem>>, vector<16x32xf32>
    %c0_9 = arith.constant 0 : index
    %c0_10 = arith.constant 0 : index
    %12 = vector.load %arg5[%c0_9, %c0_10] : memref<16x32xf32, #tpu.memory_space<vmem>>, vector<16x32xf32>
    %cst_11 = arith.constant dense<0.000000e+00> : vector<16x32xf32>
    %13 = tpu.matmul %10, %12, %cst_11 {dimension_numbers = #tpu.dot_dimension_numbers<[1], [0], [0], [1], [0, 0, 1, 1], [], []>} : vector<16x16xf32>, vector<16x32xf32>, vector<16x32xf32> -> vector<16x32xf32>
    %14 = arith.addf %11, %13 : vector<16x32xf32>
    %c0_12 = arith.constant 0 : index
    %c0_13 = arith.constant 0 : index
    %15 = vector.load %arg10[%c0_12, %c0_13] : memref<16x32xf32, #tpu.memory_space<vmem>>, vector<16x32xf32>
    tpu.vector_store %arg10[%c0_12, %c0_13], %14 {strides = array<i32>} : memref<16x32xf32, #tpu.memory_space<vmem>>, vector<16x32xf32>,
    %c0_i32_14 = arith.constant 0 : i32
    %16 = arith.cmpi eq, %arg1, %c0_i32_14 : i32
    %17 = arith.extui %16 : i1 to i32
    %c0_i32_15 = arith.constant 0 : i32
    %18 = arith.cmpi ne, %17, %c0_i32_15 : i32
    scf.if %18 {
      %c0_16 = arith.constant 0 : index
      %c0_17 = arith.constant 0 : index
      %19 = vector.load %arg10[%c0_16, %c0_17] : memref<16x32xf32, #tpu.memory_space<vmem>>, vector<16x32xf32>
      %c0_18 = arith.constant 0 : index
      %c0_19 = arith.constant 0 : index
      %20 = vector.load %arg6[%c0_18, %c0_19] : memref<1x32xf32, #tpu.memory_space<vmem>>, vector<1x32xf32>
      %21 = vector.broadcast %20 : vector<1x32xf32> to vector<16x32xf32>
      %22 = arith.addf %19, %21 : vector<16x32xf32>
      %c0_20 = arith.constant 0 : index
      %c0_21 = arith.constant 0 : index
      %23 = vector.load %arg2[%c0_20, %c0_21] : memref<16x32xf32, #tpu.memory_space<vmem>>, vector<16x32xf32>
      %24 = arith.addf %22, %23 : vector<16x32xf32>
      %cst_22 = arith.constant dense<0.000000e+00> : vector<16xf32>
      %25 = vector.multi_reduction <add>, %24, %cst_22 [1] : vector<16x32xf32> to vector<16xf32>
      %26 = vector.shape_cast %25 : vector<16xf32> to vector<16x1xf32>
      %27 = arith.mulf %24, %24 : vector<16x32xf32>
      %cst_23 = arith.constant dense<0.000000e+00> : vector<16xf32>
      %28 = vector.multi_reduction <add>, %27, %cst_23 [1] : vector<16x32xf32> to vector<16xf32>
      %29 = vector.shape_cast %28 : vector<16xf32> to vector<16x1xf32>
      %cst_24 = arith.constant 3.125000e-02 : f32
      %30 = vector.broadcast %cst_24 : f32 to vector<16x1xf32>
      %31 = arith.mulf %26, %30 : vector<16x1xf32>
      %cst_25 = arith.constant 3.125000e-02 : f32
      %32 = vector.broadcast %cst_25 : f32 to vector<16x1xf32>
      %33 = arith.mulf %29, %32 : vector<16x1xf32>
      %34 = arith.mulf %31, %31 : vector<16x1xf32>
      %35 = arith.subf %33, %34 : vector<16x1xf32>
      %cst_26 = arith.constant 0.000000e+00 : f32
      %36 = vector.broadcast %cst_26 : f32 to vector<16x1xf32>
      %37 = arith.maximumf %35, %36 : vector<16x1xf32>
      %38 = vector.broadcast %31 : vector<16x1xf32> to vector<16x32xf32>
      %39 = arith.subf %24, %38 : vector<16x32xf32>
      %cst_27 = arith.constant 9.99999974E-6 : f32
      %40 = vector.broadcast %cst_27 : f32 to vector<16x1xf32>
      %41 = arith.addf %37, %40 : vector<16x1xf32>
      %42 = math.rsqrt %41 : vector<16x1xf32>
      %43 = vector.broadcast %42 : vector<16x1xf32> to vector<16x32xf32>
      %44 = arith.mulf %39, %43 : vector<16x32xf32>
      %c0_28 = arith.constant 0 : index
      %c0_29 = arith.constant 0 : index
      %45 = vector.load %arg7[%c0_28, %c0_29] : memref<1x32xf32, #tpu.memory_space<vmem>>, vector<1x32xf32>
      %46 = vector.broadcast %45 : vector<1x32xf32> to vector<16x32xf32>
      %47 = arith.mulf %44, %46 : vector<16x32xf32>
      %c0_30 = arith.constant 0 : index
      %c0_31 = arith.constant 0 : index
      %48 = vector.load %arg8[%c0_30, %c0_31] : memref<1x32xf32, #tpu.memory_space<vmem>>, vector<1x32xf32>
      %49 = vector.broadcast %48 : vector<1x32xf32> to vector<16x32xf32>
      %50 = arith.addf %47, %49 : vector<16x32xf32>
      %c0_32 = arith.constant 0 : index
      %c0_33 = arith.constant 0 : index
      %51 = vector.load %arg9[%c0_32, %c0_33] : memref<16x32xf32, #tpu.memory_space<vmem>>, vector<16x32xf32>
      tpu.vector_store %arg9[%c0_32, %c0_33], %50 {strides = array<i32>} : memref<16x32xf32, #tpu.memory_space<vmem>>, vector<16x32xf32>,
    } else {
    }
    return
  }
  func.func @transform_0(%arg0: i32, %arg1: i32) -> (i32, i32) {
    %c0_i32 = arith.constant 0 : i32
    %c0_i32_0 = arith.constant 0 : i32
    return %arg0, %c0_i32 : i32, i32
  }
  func.func @transform_1(%arg0: i32, %arg1: i32) -> (i32, i32) {
    %c0_i32 = arith.constant 0 : i32
    %c0_i32_0 = arith.constant 0 : i32
    return %c0_i32, %arg1 : i32, i32
  }
  func.func @transform_2(%arg0: i32, %arg1: i32) -> (i32, i32) {
    %c0_i32 = arith.constant 0 : i32
    %c0_i32_0 = arith.constant 0 : i32
    return %c0_i32, %arg1 : i32, i32
  }
  func.func @transform_3(%arg0: i32, %arg1: i32) -> (i32, i32) {
    %c0_i32 = arith.constant 0 : i32
    %c0_i32_0 = arith.constant 0 : i32
    return %arg1, %c0_i32 : i32, i32
  }
  func.func @transform_4(%arg0: i32, %arg1: i32) -> (i32, i32) {
    %c0_i32 = arith.constant 0 : i32
    %c0_i32_0 = arith.constant 0 : i32
    %c0_i32_1 = arith.constant 0 : i32
    return %c0_i32, %c0_i32_0 : i32, i32
  }
  func.func @transform_5(%arg0: i32, %arg1: i32) -> (i32, i32) {
    %c0_i32 = arith.constant 0 : i32
    %c0_i32_0 = arith.constant 0 : i32
    %c0_i32_1 = arith.constant 0 : i32
    return %c0_i32, %c0_i32_0 : i32, i32
  }
  func.func @transform_6(%arg0: i32, %arg1: i32) -> (i32, i32) {
    %c0_i32 = arith.constant 0 : i32
    %c0_i32_0 = arith.constant 0 : i32
    %c0_i32_1 = arith.constant 0 : i32
    return %c0_i32, %c0_i32_0 : i32, i32
  }
  func.func @transform_7(%arg0: i32, %arg1: i32) -> (i32, i32) {
    %c0_i32 = arith.constant 0 : i32
    %c0_i32_0 = arith.constant 0 : i32
    return %arg0, %c0_i32 : i32, i32
  }
}

</mosaic_0001>

<bundles_post_ra>
// kernel: tpu_custom_call.1
= control target key start
LH: loop header
LB: loop body
LE: loop exit
PB: predicated region body
PF: predicated region fallthrough
CT: control target
= control target key end

     0   :  { %vm31_vm0 = vcmask 261120   ;;  %s468_s0 = inlined_call_operand.vmem [shape: f32[16,32], index: 0, kind: input, shape index: {}]   ;;  %s469_s1 = inlined_call_operand.vmem [shape: f32[32,16], index: 1, kind: input, shape index: {}]   ;;  %s470_s2 = inlined_call_operand.vmem [shape: f32[1,16], index: 2, kind: input, shape index: {}]   ;;  %s471_s3 = inlined_call_operand.vmem [shape: f32[16,32], index: 3, kind: input, shape index: {}]   ;;  %s472_s4 = inlined_call_operand.vmem [shape: f32[1,32], index: 4, kind: input, shape index: {}]   ;;  %s473_s5 = inlined_call_operand.vmem [shape: f32[1,32], index: 5, kind: input, shape index: {}]   ;;  %s474_s6 = inlined_call_operand.vmem [shape: f32[1,32], index: 6, kind: input, shape index: {}]   ;;  %s475_s7 = inlined_call_operand.hbm [shape: f32[16,32], index: 7, kind: output, shape index: {}]  }
   0x1   :  { %v39_v0 = vld [vmem:[%s469_s1 + $0x18] sm:$0xff]  ;;  %v38_v1 = vld [vmem:[%s469_s1 + $0x10] sm:$0xff]  ;;  %v34_v2 = vld [vmem:[%s468_s0] sm:$0xff] }
   0x2   :  { %325 = vmatprep.subr.mxu0 %v39_v0  ;;  %v37_v3 = vld [vmem:[%s469_s1 + $0x8] sm:$0xff]  ;;  %333 = vmatprep.mubr.msk.f32.mxu0 %vm31_vm0, %v34_v2 }
   0x3   :  { %326 = vmatpush3.msra.mxu0 %v39_v0 }
   0x4   :  { %12 = vsyncpa [#allocation4], 0  ;;  %327 = vmatprep.subr.mxu0 %v38_v1  ;;  %v36_v4 = vld [vmem:[%s469_s1] sm:$0xff]  ;;  %v35_v5 = vld [vmem:[%s468_s0 + $0x8] sm:$0xff]  ;;  %v373_v8 = vmov 0.0   ;;  %vm135_vm1 = vcmask 130048  }
   0x5   :  { %328 = vmatpush3.msra.mxu0 %v38_v1  ;;  %v134_v6 = vld [vmem:[%s471_s3 + $0x8] sm:$0xff]  ;;  %v133_v7 = vld [vmem:[%s471_s3] sm:$0xff]  ;;  %33 = vst.msk [vmem:[#allocation2 + $0x8] sm:$0xff] %vm31_vm0, %v373_v8  ;;  %32 = vst.msk [vmem:[#allocation2] sm:$0xff] %vm31_vm0, %v373_v8  ;;  %s374_s20 = smov [#allocation3]  }
   0x6   :  { %329 = vmatprep.subr.mxu0 %v37_v3  ;;  %336 = vmatprep.subr.mxu1 %v134_v6  ;;  %v307_v9 = vld [vmem:[%s470_s2] ss:$0 sm:$0xff]  ;;  %s296_s21 = sshll.u32 %s374_s20, 4  ;;  %s297_s21 = int_to_ptr.vmem [resolvable:$true] %s296_s21 }
   0x7   :  { %330 = vmatpush3.msra.mxu0 %v37_v3  ;;  %337 = vmatpush3.msra.mxu1 %v134_v6  ;;  %v312_v22 = vld [vmem:[%s472_s4] ss:$0 sm:$0xff]  ;;  %p356_p1 = scmp.lt.s32.totalorder %s297_s21, %s297_s21 }
   0x8   :  { %331 = vmatprep.subr.mxu0 %v36_v4  ;;  %338 = vmatprep.subr.mxu1 %v133_v7  ;;  %v313_v53 = vld [vmem:[%s473_s5] ss:$0 sm:$0xff]  ;;  %s351_s5 = scalar_lea.vmem %s297_s21, 256 }
   0x9   :  { %332 = vmatpush3.msra.mxu0 %v36_v4  ;;  %339 = vmatpush3.msra.mxu1 %v133_v7  ;;  %v314_v55 = vld [vmem:[%s474_s6] ss:$0 sm:$0xff]  ;;  %p352_p0 = scmp.ne.s32.totalorder %s297_s21, %s351_s5  ;;  %p357_p2 = scmp.lt.s32.totalorder %s351_s5, %s351_s5 }
   0xa   :  { %334 = vmatmul.mubr.msk.f32.vlgmr.msra.gmra.mxu0 %vm31_vm0, %v35_v5 }
   0xb   :  { %p358_p3 = por %p357_p2, %p356_p1 }
   0xc   :  { %v132_v16 = vld [vmem:[#allocation2 + $0x8] sm:$0xff]  ;;  %v131_v18 = vld [vmem:[#allocation2] sm:$0xff] }
   0xd   :  { %p359_p4 = pnand %p358_p3, %p352_p0 }
  0xca   :  { %v335_v10 = vpop.f32.mrf.mxu0 }
  0xcb   :  { %v126_v11 = vadd.f32 %v335_v10, %v307_v9 }
  0xcc   :  { %v120_v12 = vpop.f32.mrf.mxu0 }
  0xcd   :  { %v121_v13 = vadd.f32 %v307_v9, %v120_v12  ;;  %v130_v15 = vmax.f32 %v126_v11, 0.0 }
  0xcf   :  { %v129_v14 = vmax.f32 %v121_v13, 0.0 }
  0xd1   :  { %340 = vmatprep.mubr.msk.f32.mxu1 %vm135_vm1, %v129_v14 }
  0xd2   :  { %341 = vmatmul.mubr.msk.f32.vlgmr.msra.gmra.mxu1 %vm135_vm1, %v130_v15 }
 0x192   :  { %v342_v17 = vpop.f32.mrf.mxu1 }
 0x193   :  { %v218_v19 = vadd.f32 %v342_v17, %v132_v16 }
 0x194   :  { %v208_v20 = vpop.f32.mrf.mxu1 }
 0x195   :  { %220 = vst.msk [vmem:[#allocation2 + $0x8] sm:$0xff] %vm31_vm0, %v218_v19  ;;  %v217_v21 = vadd.f32 %v208_v20, %v131_v18 }
 0x197   :  { %219 = vst.msk [vmem:[#allocation2] sm:$0xff] %vm31_vm0, %v217_v21 }
 0x19c   :  { %v225_v23 = vld [vmem:[#allocation2 + $0x8] sm:$0xff] }
 0x19d   :  { %v234_v24 = vadd.f32 %v312_v22, %v225_v23 }
 0x19e   :  { %v224_v25 = vld [vmem:[#allocation2] sm:$0xff] }
 0x19f   :  { %v233_v26 = vadd.f32 %v312_v22, %v224_v25  ;;  %v238_v28 = vadd.f32 %v234_v24, %v35_v5 }
 0x1a1   :  { %v237_v27 = vadd.f32 %v233_v26, %v34_v2  ;;  %v246_v32 = vmul.f32 %v238_v28, %v238_v28  ;;  %v242_v33 = vsel %vm31_vm0, %v238_v28, 0.0 }
 0x1a3   :  { %v239_v29 = vsel %vm31_vm0, %v237_v27, 0.0  ;;  %v245_v30 = vmul.f32 %v237_v27, %v237_v27  ;;  %v250_v34 = vsel %vm31_vm0, %v246_v32, 0.0 }
 0x1a4   :  { %240 = vadd.xlane.f32.xlu0 %v239_v29 }
 0x1a5   :  { %v247_v31 = vsel %vm31_vm0, %v245_v30, 0.0 }
 0x1a6   :  { %248 = vadd.xlane.f32.xlu1 %v247_v31 }
 0x1a8   :  { %243 = vadd.xlane.f32.xlu0 %v242_v33 }
 0x1aa   :  { %251 = vadd.xlane.f32.xlu1 %v250_v34 }
 0x22d   :  { %v241_v35 = vpop.xlane.xlu0 %240 }
 0x22e   :  { %v253_v36 = vmul.f32 0.03125, %v241_v35 }
 0x22f   :  { %v249_v37 = vpop.xlane.xlu1 %248 }
 0x230   :  { %v257_v38 = vmul.f32 %v253_v36, %v253_v36  ;;  %v255_v39 = vmul.f32 0.03125, %v249_v37  ;;  %v263_v51 = vsub.f32 %v237_v27, %v253_v36 }
 0x231   :  { %v244_v40 = vpop.xlane.xlu0 %243 }
 0x232   :  { %v259_v41 = vsub.f32 %v255_v39, %v257_v38  ;;  %v254_v42 = vmul.f32 0.03125, %v244_v40 }
 0x233   :  { %v252_v43 = vpop.xlane.xlu1 %251 }
 0x234   :  { %v261_v44 = vmax.f32 %v259_v41, 0.0  ;;  %v258_v45 = vmul.f32 %v254_v42, %v254_v42  ;;  %v256_v46 = vmul.f32 0.03125, %v252_v43  ;;  %v264_v56 = vsub.f32 %v238_v28, %v254_v42 }
 0x236   :  { %v265_v47 = vadd.f32 1e-05, %v261_v44  ;;  %v260_v48 = vsub.f32 %v256_v46, %v258_v45 }
 0x238   :  { %347 = vrsqrt.f32 %v265_v47  ;;  %v262_v49 = vmax.f32 %v260_v48, 0.0 }
 0x23a   :  { %v266_v50 = vadd.f32 1e-05, %v262_v49 }
 0x23c   :  { %349 = vrsqrt.f32 %v266_v50 }
 0x245   :  { %v348_v52 = vpop.eup %347 }
 0x246   :  { %v269_v54 = vmul.f32 %v348_v52, %v263_v51 }
 0x248   :  { %v278_v57 = vmul.f32 %v313_v53, %v269_v54 }
 0x249   :  { %v350_v58 = vpop.eup %349 }
 0x24a   :  { %v270_v59 = vmul.f32 %v350_v58, %v264_v56  ;;  %v287_v60 = vadd.f32 %v314_v55, %v278_v57 }
 0x24c   :  { %v279_v61 = vmul.f32 %v313_v53, %v270_v59  ;;  %289 = vst.msk [vmem:[#allocation3] sm:$0xff] %vm31_vm0, %v287_v60 }
 0x24e   :  { %v288_v62 = vadd.f32 %v314_v55, %v279_v61 }
 0x250   :  { %290 = vst.msk [vmem:[#allocation3 + $0x8] sm:$0xff] %vm31_vm0, %v288_v62 }
 0x251   :  { %362 = shalt.err (!%p359_p4)
}
 0x252   :  { %s375_s6 = smov 128   ;;  %s376_s22 = smov 8  }
 0x253   :  { %302 = dma.vmem_to_hbm [thread:$0]  %s297_s21, 256, %s475_s7, [#allocation4], %s375_s6, %s375_s6, %s376_s22  }
 0x254   :  { %371 = dma.done.wait [#allocation4], 256  }
 0x255   :  { %372 = vsyncadd [#allocation4], 4294967040 }
 0x256   :  { %306 = vsyncpa [#allocation4], 1 }

</bundles_post_ra>
